<compile_context>
chip_gen: v7x
topology: tpu7x:2x2x1
jax: 0.10.0
libtpu: 0.0.40
codegen_flags: <defaults>
</compile_context>

<pallas_src>
import functools

import jax
import jax.numpy as jnp
from jax import lax
from jax.experimental import pallas as pl
from jax.experimental.pallas import tpu as pltpu


def _round_up(x: int, m: int) -> int:
    return (x + m - 1) // m * m


def _contrastive_kernel(out_ref, tgt_ref, loss_ref, m_sc, l_sc, diag_sc,
                        *, n_valid: int, tile: int, needs_col_mask: bool):
    i = pl.program_id(0)          # row tile (outputs)
    j = pl.program_id(1)          # column tile (targets) -- reduction axis

    @pl.when(j == 0)
    def _():
        m_sc[...] = jnp.full_like(m_sc, -jnp.inf)
        l_sc[...] = jnp.zeros_like(l_sc)
        diag_sc[...] = jnp.zeros_like(diag_sc)

    o = out_ref[...].astype(jnp.float32)
    t = tgt_ref[...].astype(jnp.float32)

    # Row-normalize: rsqrt (EUP) + multiply (VPU) instead of sqrt + divide.
    o_n = o * lax.rsqrt(jnp.sum(o * o, axis=1, keepdims=True))
    t_n = t * lax.rsqrt(jnp.sum(t * t, axis=1, keepdims=True))

    # (TM, TN) cosine-similarity tile on the MXU.  Contracting dim 1 of both
    # operands expresses A @ B.T directly -- no transposed copy of t_n.
    s = lax.dot_general(
        o_n, t_n,
        dimension_numbers=(((1,), (1,)), ((), ())),
        preferred_element_type=jnp.float32,
    )

    if needs_col_mask:
        # Mask padded target columns (global col index >= n_valid) to -inf so
        # they contribute nothing to the softmax.
        col = j * tile + lax.broadcasted_iota(jnp.int32, s.shape, 1)
        s = jnp.where(col < n_valid, s, -jnp.inf)

    # Online softmax accumulation across column tiles.
    m_prev = m_sc[...]
    m_new = jnp.maximum(m_prev, jnp.max(s, axis=1, keepdims=True))
    alpha = jnp.exp(m_prev - m_new)
    l_sc[...] = alpha * l_sc[...] + jnp.sum(jnp.exp(s - m_new), axis=1,
                                            keepdims=True)
    m_sc[...] = m_new

    # Diagonal logits (labels == arange(N)) live only in the column tile that
    # matches the row tile; rowwise dot on data already in vregs.
    @pl.when(j == i)
    def _():
        diag_sc[...] = jnp.sum(o_n * t_n, axis=1, keepdims=True)

    # Finalize once per row tile: per-row xent = logsumexp(row) - diag.
    @pl.when(j == pl.num_programs(1) - 1)
    def _():
        loss_ref[...] = m_sc[...] + jnp.log(l_sc[...]) - diag_sc[...]


def contrastive_loss(outputs: jax.Array, targets: jax.Array, *,
                     tile: int = 256) -> dict:
    """JAX wrapper mirroring ContrastiveLoss.forward (mask=None)."""
    assert outputs.shape == targets.shape and outputs.ndim == 2
    n, d = outputs.shape

    # Tile size: multiple of 8 (sublane granule); 256 is MXU-native on
    # v6e/v7x and 2x the native granule on v5e.  Small batches collapse to a
    # single tile.
    tm = min(tile, _round_up(n, 8))
    n_pad = _round_up(n, tm)
    if n_pad != n:
        pad = ((0, n_pad - n), (0, 0))
        outputs = jnp.pad(outputs, pad)
        targets = jnp.pad(targets, pad)

    grid = (n_pad // tm, n_pad // tm)

    kernel = functools.partial(
        _contrastive_kernel,
        n_valid=n, tile=tm, needs_col_mask=(n_pad != n),
    )

    per_row = pl.pallas_call(
        kernel,
        out_shape=jax.ShapeDtypeStruct((n_pad, 1), jnp.float32),
        grid_spec=pltpu.PrefetchScalarGridSpec(
            num_scalar_prefetch=0,
            grid=grid,
            in_specs=[
                # Row tile of outputs: resident across the column axis.
                pl.BlockSpec((tm, d), lambda i, j: (i, 0)),
                # Column tile of targets: streamed (double-buffered DMA).
                pl.BlockSpec((tm, d), lambda i, j: (j, 0)),
            ],
            out_specs=pl.BlockSpec((tm, 1), lambda i, j: (i, 0)),
            scratch_shapes=[
                pltpu.VMEM((tm, 1), jnp.float32),   # running max
                pltpu.VMEM((tm, 1), jnp.float32),   # running sum(exp)
                pltpu.VMEM((tm, 1), jnp.float32),   # diagonal logit
            ],
        ),
        compiler_params=pltpu.CompilerParams(
            dimension_semantics=("parallel", "arbitrary"),
        ),
    )(outputs, targets)

    # Padded rows are sliced off before the mean (their entries are garbage).
    loss = jnp.mean(per_row[:n, 0])
    return {"loss": loss}


def _reference_loss(outputs, targets):
    """Pure-JAX reference matching the PyTorch semantics (mask=None)."""
    logits = outputs @ targets.T
    logits = logits / jnp.linalg.norm(outputs, axis=1)[:, None]
    logits = logits / jnp.linalg.norm(targets, axis=1)[None, :]
    labels = jnp.arange(outputs.shape[0])
    logp = jax.nn.log_softmax(logits, axis=1)
    return -jnp.mean(logp[jnp.arange(outputs.shape[0]), labels])


if __name__ == "__main__":
    key = jax.random.PRNGKey(0)
    k1, k2, k3, k4 = jax.random.split(key, 4)

    # Case 1: small batch, exact single-tile fit.
    N, D = 8, 32
    outputs = jax.random.normal(k1, (N, D), dtype=jnp.float32)
    targets = jax.random.normal(k2, (N, D), dtype=jnp.float32)
    loss = jax.block_until_ready(contrastive_loss(outputs, targets)["loss"])
    ref = _reference_loss(outputs, targets)
    assert jnp.allclose(loss, ref, atol=1e-5, rtol=1e-5), (loss, ref)

    # Case 2: multi-tile grid with padding (exercises the online softmax,
    # the diagonal tile selection and the padded-column masking).
    N2, D2 = 12, 32
    outputs2 = jax.random.normal(k3, (N2, D2), dtype=jnp.float32)
    targets2 = jax.random.normal(k4, (N2, D2), dtype=jnp.float32)
    loss2 = jax.block_until_ready(
        contrastive_loss(outputs2, targets2, tile=8)["loss"])
    ref2 = _reference_loss(outputs2, targets2)
    assert jnp.allclose(loss2, ref2, atol=1e-5, rtol=1e-5), (loss2, ref2)

    print("KERNEL_OK")
</pallas_src>

<mosaic_0001>
module attributes {stable_mosaic.version = 11 : i64} {
  func.func @_contrastive_kernel(%arg0: i32, %arg1: i32, %arg2: memref<8x32xf32, #tpu.memory_space<vmem>>, %arg3: memref<8x32xf32, #tpu.memory_space<vmem>>, %arg4: memref<8x1xf32, #tpu.memory_space<vmem>>, %arg5: memref<8x1xf32, #tpu.memory_space<vmem>>, %arg6: memref<8x1xf32, #tpu.memory_space<vmem>>, %arg7: memref<8x1xf32, #tpu.memory_space<vmem>>) attributes {dimension_semantics = [#tpu.dimension_semantics<parallel>, #tpu.dimension_semantics<arbitrary>], iteration_bounds = array<i64: 1, 1>, scalar_prefetch = 0 : i64, scratch_operands = 3 : i64, tpu.core_type = #tpu.core_type<tc>, window_params = [{transform_indices = @transform_0, window_bounds = array<i64: 8, 32>}, {transform_indices = @transform_1, window_bounds = array<i64: 8, 32>}, {transform_indices = @transform_2, window_bounds = array<i64: 8, 1>}]} {
    %c0_i32 = arith.constant 0 : i32
    %0 = arith.cmpi eq, %arg1, %c0_i32 : i32
    %1 = arith.extui %0 : i1 to i32
    %c0_i32_0 = arith.constant 0 : i32
    %2 = arith.cmpi ne, %1, %c0_i32_0 : i32
    scf.if %2 {
      %cst_19 = arith.constant 0xFF800000 : f32
      %40 = vector.broadcast %cst_19 : f32 to vector<8x1xf32>
      %c0_20 = arith.constant 0 : index
      %c0_21 = arith.constant 0 : index
      %41 = vector.load %arg5[%c0_20, %c0_21] : memref<8x1xf32, #tpu.memory_space<vmem>>, vector<8x1xf32>
      tpu.vector_store %arg5[%c0_20, %c0_21], %40 {strides = array<i32>} : memref<8x1xf32, #tpu.memory_space<vmem>>, vector<8x1xf32>,
      %cst_22 = arith.constant 0.000000e+00 : f32
      %42 = vector.broadcast %cst_22 : f32 to vector<8x1xf32>
      %c0_23 = arith.constant 0 : index
      %c0_24 = arith.constant 0 : index
      %43 = vector.load %arg6[%c0_23, %c0_24] : memref<8x1xf32, #tpu.memory_space<vmem>>, vector<8x1xf32>
      tpu.vector_store %arg6[%c0_23, %c0_24], %42 {strides = array<i32>} : memref<8x1xf32, #tpu.memory_space<vmem>>, vector<8x1xf32>,
      %cst_25 = arith.constant 0.000000e+00 : f32
      %44 = vector.broadcast %cst_25 : f32 to vector<8x1xf32>
      %c0_26 = arith.constant 0 : index
      %c0_27 = arith.constant 0 : index
      %45 = vector.load %arg7[%c0_26, %c0_27] : memref<8x1xf32, #tpu.memory_space<vmem>>, vector<8x1xf32>
      tpu.vector_store %arg7[%c0_26, %c0_27], %44 {strides = array<i32>} : memref<8x1xf32, #tpu.memory_space<vmem>>, vector<8x1xf32>,
    } else {
    }
    %c0 = arith.constant 0 : index
    %c0_1 = arith.constant 0 : index
    %3 = vector.load %arg2[%c0, %c0_1] : memref<8x32xf32, #tpu.memory_space<vmem>>, vector<8x32xf32>
    %c0_2 = arith.constant 0 : index
    %c0_3 = arith.constant 0 : index
    %4 = vector.load %arg3[%c0_2, %c0_3] : memref<8x32xf32, #tpu.memory_space<vmem>>, vector<8x32xf32>
    %5 = arith.mulf %3, %3 : vector<8x32xf32>
    %cst = arith.constant dense<0.000000e+00> : vector<8xf32>
    %6 = vector.multi_reduction <add>, %5, %cst [1] : vector<8x32xf32> to vector<8xf32>
    %7 = vector.shape_cast %6 : vector<8xf32> to vector<8x1xf32>
    %8 = math.rsqrt %7 : vector<8x1xf32>
    %9 = vector.broadcast %8 : vector<8x1xf32> to vector<8x32xf32>
    %10 = arith.mulf %3, %9 : vector<8x32xf32>
    %11 = arith.mulf %4, %4 : vector<8x32xf32>
    %cst_4 = arith.constant dense<0.000000e+00> : vector<8xf32>
    %12 = vector.multi_reduction <add>, %11, %cst_4 [1] : vector<8x32xf32> to vector<8xf32>
    %13 = vector.shape_cast %12 : vector<8xf32> to vector<8x1xf32>
    %14 = math.rsqrt %13 : vector<8x1xf32>
    %15 = vector.broadcast %14 : vector<8x1xf32> to vector<8x32xf32>
    %16 = arith.mulf %4, %15 : vector<8x32xf32>
    %cst_5 = arith.constant dense<0.000000e+00> : vector<8x8xf32>
    %17 = tpu.matmul %10, %16, %cst_5 {dimension_numbers = #tpu.dot_dimension_numbers<[1], [1], [0], [0], [0, 0, 1, 0], [], []>} : vector<8x32xf32>, vector<8x32xf32>, vector<8x8xf32> -> vector<8x8xf32>
    %c0_6 = arith.constant 0 : index
    %c0_7 = arith.constant 0 : index
    %18 = vector.load %arg5[%c0_6, %c0_7] : memref<8x1xf32, #tpu.memory_space<vmem>>, vector<8x1xf32>
    %cst_8 = arith.constant dense<0xFF800000> : vector<8xf32>
    %19 = vector.multi_reduction <maximumf>, %17, %cst_8 [1] : vector<8x8xf32> to vector<8xf32>
    %20 = vector.shape_cast %19 : vector<8xf32> to vector<8x1xf32>
    %21 = arith.maximumf %18, %20 : vector<8x1xf32>
    %22 = arith.subf %18, %21 : vector<8x1xf32>
    %23 = math.exp %22 : vector<8x1xf32>
    %c0_9 = arith.constant 0 : index
    %c0_10 = arith.constant 0 : index
    %24 = vector.load %arg6[%c0_9, %c0_10] : memref<8x1xf32, #tpu.memory_space<vmem>>, vector<8x1xf32>
    %25 = arith.mulf %23, %24 : vector<8x1xf32>
    %26 = vector.broadcast %21 : vector<8x1xf32> to vector<8x8xf32>
    %27 = arith.subf %17, %26 : vector<8x8xf32>
    %28 = math.exp %27 : vector<8x8xf32>
    %cst_11 = arith.constant dense<0.000000e+00> : vector<8xf32>
    %29 = vector.multi_reduction <add>, %28, %cst_11 [1] : vector<8x8xf32> to vector<8xf32>
    %30 = vector.shape_cast %29 : vector<8xf32> to vector<8x1xf32>
    %31 = arith.addf %25, %30 : vector<8x1xf32>
    %c0_12 = arith.constant 0 : index
    %c0_13 = arith.constant 0 : index
    %32 = vector.load %arg6[%c0_12, %c0_13] : memref<8x1xf32, #tpu.memory_space<vmem>>, vector<8x1xf32>
    tpu.vector_store %arg6[%c0_12, %c0_13], %31 {strides = array<i32>} : memref<8x1xf32, #tpu.memory_space<vmem>>, vector<8x1xf32>,
    %c0_14 = arith.constant 0 : index
    %c0_15 = arith.constant 0 : index
    %33 = vector.load %arg5[%c0_14, %c0_15] : memref<8x1xf32, #tpu.memory_space<vmem>>, vector<8x1xf32>
    tpu.vector_store %arg5[%c0_14, %c0_15], %21 {strides = array<i32>} : memref<8x1xf32, #tpu.memory_space<vmem>>, vector<8x1xf32>,
    %34 = arith.cmpi eq, %arg1, %arg0 : i32
    %35 = arith.extui %34 : i1 to i32
    %c0_i32_16 = arith.constant 0 : i32
    %36 = arith.cmpi ne, %35, %c0_i32_16 : i32
    scf.if %36 {
      %40 = arith.mulf %10, %16 : vector<8x32xf32>
      %cst_19 = arith.constant dense<0.000000e+00> : vector<8xf32>
      %41 = vector.multi_reduction <add>, %40, %cst_19 [1] : vector<8x32xf32> to vector<8xf32>
      %42 = vector.shape_cast %41 : vector<8xf32> to vector<8x1xf32>
      %c0_20 = arith.constant 0 : index
      %c0_21 = arith.constant 0 : index
      %43 = vector.load %arg7[%c0_20, %c0_21] : memref<8x1xf32, #tpu.memory_space<vmem>>, vector<8x1xf32>
      tpu.vector_store %arg7[%c0_20, %c0_21], %42 {strides = array<i32>} : memref<8x1xf32, #tpu.memory_space<vmem>>, vector<8x1xf32>,
    } else {
    }
    %c0_i32_17 = arith.constant 0 : i32
    %37 = arith.cmpi eq, %arg1, %c0_i32_17 : i32
    %38 = arith.extui %37 : i1 to i32
    %c0_i32_18 = arith.constant 0 : i32
    %39 = arith.cmpi ne, %38, %c0_i32_18 : i32
    scf.if %39 {
      %c0_19 = arith.constant 0 : index
      %c0_20 = arith.constant 0 : index
      %40 = vector.load %arg5[%c0_19, %c0_20] : memref<8x1xf32, #tpu.memory_space<vmem>>, vector<8x1xf32>
      %c0_21 = arith.constant 0 : index
      %c0_22 = arith.constant 0 : index
      %41 = vector.load %arg6[%c0_21, %c0_22] : memref<8x1xf32, #tpu.memory_space<vmem>>, vector<8x1xf32>
      %42 = math.log %41 : vector<8x1xf32>
      %43 = arith.addf %40, %42 : vector<8x1xf32>
      %c0_23 = arith.constant 0 : index
      %c0_24 = arith.constant 0 : index
      %44 = vector.load %arg7[%c0_23, %c0_24] : memref<8x1xf32, #tpu.memory_space<vmem>>, vector<8x1xf32>
      %45 = arith.subf %43, %44 : vector<8x1xf32>
      %c0_25 = arith.constant 0 : index
      %c0_26 = arith.constant 0 : index
      %46 = vector.load %arg4[%c0_25, %c0_26] : memref<8x1xf32, #tpu.memory_space<vmem>>, vector<8x1xf32>
      tpu.vector_store %arg4[%c0_25, %c0_26], %45 {strides = array<i32>} : memref<8x1xf32, #tpu.memory_space<vmem>>, vector<8x1xf32>,
    } else {
    }
    return
  }
  func.func @transform_0(%arg0: i32, %arg1: i32) -> (i32, i32) {
    %c0_i32 = arith.constant 0 : i32
    %c0_i32_0 = arith.constant 0 : i32
    return %arg0, %c0_i32 : i32, i32
  }
  func.func @transform_1(%arg0: i32, %arg1: i32) -> (i32, i32) {
    %c0_i32 = arith.constant 0 : i32
    %c0_i32_0 = arith.constant 0 : i32
    return %arg1, %c0_i32 : i32, i32
  }
  func.func @transform_2(%arg0: i32, %arg1: i32) -> (i32, i32) {
    %c0_i32 = arith.constant 0 : i32
    %c0_i32_0 = arith.constant 0 : i32
    return %arg0, %c0_i32 : i32, i32
  }
}

</mosaic_0001>

<bundles_post_ra>
// kernel: tpu_custom_call.1
= control target key start
LH: loop header
LB: loop body
LE: loop exit
PB: predicated region body
PF: predicated region fallthrough
CT: control target
= control target key end

     0   :  { %7 = vsyncpa [#allocation6], 0  ;;  %s323_s0 = inlined_call_operand.hbm [shape: f32[8,32], index: 0, kind: input, shape index: {}]   ;;  %s324_s1 = inlined_call_operand.hbm [shape: f32[8,32], index: 1, kind: input, shape index: {}]   ;;  %s325_s2 = inlined_call_operand.vmem [shape: f32[8,1], index: 2, kind: output, shape index: {}]  }
   0x1   :  { %8 = vsyncpa [#allocation8], 0  ;;  %s261_s9 = smov [#allocation5]   ;;  %s262_s11 = smov [#allocation7]  }
   0x2   :  { %s15_s10 = sshll.u32 %s261_s9, 4  ;;  %s25_s12 = sshll.u32 %s262_s11, 4  ;;  %s16_s10 = int_to_ptr.vmem [resolvable:$true] %s15_s10  ;;  %s26_s12 = int_to_ptr.vmem [resolvable:$true] %s25_s12 }
   0x3   :  { %s213_s15 = scalar_lea.hbm %s323_s0, 128 }
   0x4   :  { %p214_p0 = scmp.ne.s32.totalorder %s323_s0, %s213_s15  ;;  %p217_p1 = scmp.lt.u32.totalorder %s213_s15, %s323_s0 }
   0x6   :  { %p219_p2 = pnand %p217_p1, %p214_p0 }
   0x8   :  { %222 = shalt.err (!%p219_p2)
}
   0x9   :  { %s223_s20 = scalar_lea.vmem %s16_s10, 128  ;;  %p228_p4 = scmp.lt.s32.totalorder %s16_s10, %s16_s10 }
   0xa   :  { %p224_p3 = scmp.ne.s32.totalorder %s16_s10, %s223_s20  ;;  %p229_p5 = scmp.lt.s32.totalorder %s223_s20, %s223_s20 }
   0xc   :  { %p230_p6 = por %p229_p5, %p228_p4 }
   0xe   :  { %p231_p7 = pnand %p230_p6, %p224_p3 }
  0x10   :  { %234 = shalt.err (!%p231_p7)
}
  0x11   :  { %18 = dma.hbm_to_vmem [thread:$0]  %s323_s0, 128, %s16_s10, [#allocation6]  }
  0x12   :  { %s235_s25 = scalar_lea.hbm %s324_s1, 128 }
  0x13   :  { %p236_p8 = scmp.ne.s32.totalorder %s324_s1, %s235_s25  ;;  %p239_p9 = scmp.lt.u32.totalorder %s235_s25, %s324_s1 }
  0x15   :  { %p241_p10 = pnand %p239_p9, %p236_p8 }
  0x17   :  { %244 = shalt.err (!%p241_p10)
}
  0x18   :  { %s245_s30 = scalar_lea.vmem %s26_s12, 128  ;;  %p250_p12 = scmp.lt.s32.totalorder %s26_s12, %s26_s12 }
  0x19   :  { %p246_p11 = scmp.ne.s32.totalorder %s26_s12, %s245_s30  ;;  %p251_p13 = scmp.lt.s32.totalorder %s245_s30, %s245_s30 }
  0x1b   :  { %p252_p0 = por %p251_p13, %p250_p12 }
  0x1d   :  { %p253_p1 = pnand %p252_p0, %p246_p11 }
  0x1f   :  { %256 = shalt.err (!%p253_p1)
}
  0x20   :  { %28 = dma.hbm_to_vmem [thread:$0]  %s324_s1, 128, %s26_s12, [#allocation8]  }
  0x21   :  { %257 = dma.done.wait [#allocation6], 128  }
  0x22   :  { %258 = vsyncadd [#allocation6], 4294967168 }
  0x23   :  { %259 = dma.done.wait [#allocation8], 128  }
  0x24   :  { %260 = vsyncadd [#allocation8], 4294967168  ;;  %v44_v0 = vld [vmem:[#allocation7] sm:$0xff]  ;;  %vm46_vm0 = vcmask 261120   ;;  %v43_v1 = vld [vmem:[#allocation5] sm:$0xff]  ;;  %vm39_vm1 = vcmask 7168  }
  0x25   :  { %v52_v2 = vmul.f32 %v44_v0, %v44_v0  ;;  %v45_v3 = vmul.f32 %v43_v1, %v43_v1  ;;  %v263_v6 = vmov 0.0   ;;  %vm264_vm2 = vmmov 0  }
  0x26   :  { %41 = vst.msk [vmem:[#allocation3] sm:$0xff] %vm39_vm1, %v263_v6  ;;  %190 = vmatprep.subr.mxu0 %v263_v6  ;;  %42 = vst.msk [vmem:[#allocation4] sm:$0xff] %vm39_vm1, %v263_v6  ;;  %192 = vmatprep.mubr.msk.f32.mxu0 %vm264_vm2, %v263_v6  ;;  %v265_v14 = vmov -inf   ;;  %vm135_vm3 = vcmask 64512   ;;  %v266_v18 = vmov 0  }
  0x27   :  { %v53_v4 = vsel %vm46_vm0, %v52_v2, 0.0  ;;  %v47_v5 = vsel %vm46_vm0, %v45_v3, 0.0  ;;  %40 = vst.msk [vmem:[#allocation2] sm:$0xff] %vm39_vm1, %v265_v14  ;;  %201 = vset.pattern.permute.xlu1 %v266_v18  ;;  %202 = vset.pattern.permute.xlu0 %v266_v18 }
  0x28   :  { %54 = vadd.xlane.f32.xlu0 %v53_v4 }
  0x2c   :  { %48 = vadd.xlane.f32.xlu0 %v47_v5 }
  0x2d   :  { %v143_v31 = vld [vmem:[#allocation3] sm:$0xff] }
  0x2e   :  { %v134_v19 = vld [vmem:[#allocation2] sm:$0xff] }
  0xb5   :  { %v55_v7 = vpop.xlane.xlu0 %54 }
  0xb6   :  { %203 = vrsqrt.f32 %v55_v7 }
  0xb9   :  { %v49_v8 = vpop.xlane.xlu0 %48 }
  0xba   :  { %205 = vrsqrt.f32 %v49_v8 }
  0xc0   :  { %v204_v9 = vpop.eup %203 }
  0xc1   :  { %v57_v10 = vmul.f32 %v204_v9, %v44_v0 }
  0xc3   :  { %191 = vmatpush3.xpose.msk.msra.mxu0 %vm46_vm0, %v57_v10 }
  0xc4   :  { %v206_v11 = vpop.eup %205 }
  0xc5   :  { %v51_v12 = vmul.f32 %v206_v11, %v43_v1 }
  0xc7   :  { %193 = vmatmul.mubr.msk.f32.vlgmr.msra.gmra.mrb[0].mxu0 %vm46_vm0, %v51_v12  ;;  %v164_v13 = vmul.f32 %v57_v10, %v51_v12 }
  0xc9   :  { %v165_v28 = vsel %vm46_vm0, %v164_v13, 0.0 }
 0x19a   :  { %v130_v15 = vpop.f32.mrb[0].mxu0 }
 0x19b   :  { %v194_v16 = vpop.f32.mrb[1].mxu0  ;;  %v136_v17 = vsel %vm135_vm3, %v130_v15, -inf }
 0x19c   :  { %137 = vmax.xlane.f32.xlu1 %v136_v17 }
 0x229   :  { %v138_v20 = vpop.xlane.xlu1 %137 }
 0x22a   :  { %v139_v21 = vmax.f32 %v134_v19, %v138_v20 }
 0x22c   :  { %v140_v22 = vsub.f32 %v134_v19, %v139_v21  ;;  %159 = vst.msk [vmem:[#allocation2] sm:$0xff] %vm39_vm1, %v139_v21  ;;  %147 = vperm.xlu1 %201, %v139_v21  }
 0x22e   :  { %v141_v29 = vmul.f32 1.442695, %v140_v22 }
 0x233   :  { %v172_v39 = vld [vmem:[#allocation2] sm:$0xff] }
 0x2ab   :  { %v148_v23 = vpop.permute.xlu1 %147 }
 0x2ac   :  { %v150_v24 = vsub.f32 %v130_v15, %v148_v23 }
 0x2ae   :  { %v151_v25 = vmul.f32 1.442695, %v150_v24 }
 0x2b0   :  { %207 = vpow2.f32 %v151_v25 }
 0x2b1   :  { %209 = vpow2.f32 %v141_v29 }
 0x2ba   :  { %v208_v26 = vpop.eup %207 }
 0x2bb   :  { %v153_v27 = vsel %vm135_vm3, %v208_v26, 0.0  ;;  %v210_v30 = vpop.eup %209 }
 0x2bc   :  { %154 = vadd.xlane.f32.xlu0 %v153_v27  ;;  %v144_v32 = vmul.f32 %v210_v30, %v143_v31 }
 0x2c0   :  { %166 = vadd.xlane.f32.xlu0 %v165_v28 }
 0x349   :  { %v155_v33 = vpop.xlane.xlu0 %154 }
 0x34a   :  { %v156_v34 = vadd.f32 %v155_v33, %v144_v32 }
 0x34c   :  { %158 = vst.msk [vmem:[#allocation3] sm:$0xff] %vm39_vm1, %v156_v34 }
 0x34d   :  { %v167_v35 = vpop.xlane.xlu0 %166 }
 0x34e   :  { %168 = vst.msk [vmem:[#allocation4] sm:$0xff] %vm39_vm1, %v167_v35 }
 0x353   :  { %v173_v36 = vld [vmem:[#allocation3] sm:$0xff] }
 0x354   :  { %211 = vlog2.f32 %v173_v36 }
 0x355   :  { %v177_v41 = vld [vmem:[#allocation4] sm:$0xff] }
 0x35e   :  { %v212_v37 = vpop.eup %211 }
 0x35f   :  { %v175_v38 = vmul.f32 0.6931472, %v212_v37 }
 0x361   :  { %v176_v40 = vadd.f32 %v175_v38, %v172_v39 }
 0x363   :  { %v178_v42 = vsub.f32 %v176_v40, %v177_v41 }
 0x365   :  { %179 = vst.msk [vmem:[%s325_s2] sm:$0xff] %vm39_vm1, %v178_v42 }
 0x366   :  { %184 = vsyncpa [#allocation6], 1 }
 0x367   :  { %185 = vsyncpa [#allocation8], 1 }

</bundles_post_ra>
